<compile_context>
chip_gen: v5e
topology: v5e:2x2
jax: 0.10.0
libtpu: 0.0.40
codegen_flags: <defaults>
</compile_context>

<pallas_src>
import jax
import jax.numpy as jnp
import numpy as np
from jax.experimental import pallas as pl
from jax.experimental.pallas import tpu as pltpu

_SUBLANE = 8
_LANE = 128
_BLOCK_ROWS = 1024  # (1024, 128) f32 tile = 512 KiB; comfortably inside VMEM
                    # with double buffering on v5e/v6e/v7x.


# --------------------------------- kernel ------------------------------------
def _square_kernel(x_ref, o_ref):
    """Elementwise square of one (block_rows, 128) VMEM tile."""
    x = x_ref[...]
    o_ref[...] = x * x          # torch.square(x)


# --------------------------------- wrapper ------------------------------------
def square(x, *, block_rows=_BLOCK_ROWS, lanes=_LANE):
    """torch.square(x) for an arbitrary-shaped array via a Pallas TPU kernel."""
    shape, dtype = x.shape, x.dtype
    total = int(np.prod(shape)) if shape else 1

    # Lane-dense 2-D layout: (rows, 128). Rows are padded to a sublane multiple
    # and to a whole number of blocks so every tile is full-size (no masked
    # loads/stores, no ragged last block).
    rows = pl.cdiv(total, lanes)
    rows = pl.cdiv(rows, _SUBLANE) * _SUBLANE
    bm = rows if rows <= block_rows else block_rows
    rows = pl.cdiv(rows, bm) * bm
    padded = rows * lanes

    flat = jnp.ravel(x)
    if padded != total:
        flat = jnp.pad(flat, (0, padded - total))
    x2 = flat.reshape(rows, lanes)

    out2 = pl.pallas_call(
        _square_kernel,
        out_shape=jax.ShapeDtypeStruct((rows, lanes), dtype),
        grid=(rows // bm,),
        in_specs=[pl.BlockSpec((bm, lanes), lambda i: (i, 0),
                               memory_space=pltpu.MemorySpace.VMEM)],
        out_specs=pl.BlockSpec((bm, lanes), lambda i: (i, 0),
                               memory_space=pltpu.MemorySpace.VMEM),
        compiler_params=pltpu.CompilerParams(
            dimension_semantics=("parallel",)),
    )(x2)

    out = out2.reshape(-1)
    if padded != total:
        out = out[:total]
    return out.reshape(shape)


# ----------------------------------- main -------------------------------------
if __name__ == "__main__":
    key = jax.random.PRNGKey(0)
    k1, k2, k3 = jax.random.split(key, 3)

    fwd = jax.jit(square)

    # Shape SquareLayer actually sees inside SCCNet: (B, Nu, 1, T) activation.
    x1 = jax.random.normal(k1, (2, 8, 1, 64), jnp.float32)
    # Ragged shape — exercises the pad / un-pad path.
    x2 = jax.random.normal(k2, (3, 5, 7, 11), jnp.float32)
    # Larger shape — exercises the multi-tile "parallel" grid path.
    x3 = jax.random.normal(k3, (4, 256, 1024), jnp.float32)

    for x in (x1, x2, x3):
        out = jax.block_until_ready(fwd(x))
        np.testing.assert_allclose(np.asarray(out), np.asarray(jnp.square(x)),
                                   rtol=1e-6, atol=1e-6)
        assert out.shape == x.shape and out.dtype == x.dtype

    print("KERNEL_OK")
</pallas_src>

<mosaic_0001>
module attributes {stable_mosaic.version = 11 : i64} {
  func.func @_square_kernel(%arg0: i32, %arg1: memref<8x128xf32, #tpu.memory_space<vmem>>, %arg2: memref<8x128xf32, #tpu.memory_space<vmem>>) attributes {dimension_semantics = [#tpu.dimension_semantics<parallel>], iteration_bounds = array<i64: 1>, scalar_prefetch = 0 : i64, scratch_operands = 0 : i64, tpu.core_type = #tpu.core_type<tc>, window_params = [{transform_indices = @transform_0, window_bounds = array<i64: 8, 128>}, {transform_indices = @transform_1, window_bounds = array<i64: 8, 128>}]} {
    %c0 = arith.constant 0 : index
    %c0_0 = arith.constant 0 : index
    %0 = vector.load %arg1[%c0, %c0_0] : memref<8x128xf32, #tpu.memory_space<vmem>>, vector<8x128xf32>
    %1 = arith.mulf %0, %0 : vector<8x128xf32>
    %c0_1 = arith.constant 0 : index
    %c0_2 = arith.constant 0 : index
    %2 = vector.load %arg2[%c0_1, %c0_2] : memref<8x128xf32, #tpu.memory_space<vmem>>, vector<8x128xf32>
    tpu.vector_store %arg2[%c0_1, %c0_2], %1 {strides = array<i32>} : memref<8x128xf32, #tpu.memory_space<vmem>>, vector<8x128xf32>,
    return
  }
  func.func @transform_0(%arg0: i32) -> (i32, i32) {
    %c0_i32 = arith.constant 0 : i32
    %c0_i32_0 = arith.constant 0 : i32
    return %arg0, %c0_i32 : i32, i32
  }
  func.func @transform_1(%arg0: i32) -> (i32, i32) {
    %c0_i32 = arith.constant 0 : i32
    %c0_i32_0 = arith.constant 0 : i32
    return %arg0, %c0_i32 : i32, i32
  }
}

</mosaic_0001>

<bundles_post_ra>
// kernel: square.1
= control target key start
LH: loop header
LB: loop body
LE: loop exit
PB: predicated region body
PF: predicated region fallthrough
CT: control target
= control target key end

     0   :  { %s31_s0 = inlined_call_operand.vmem [shape: f32[8,128], index: 0, kind: input, shape index: {}]   ;;  %s32_s1 = inlined_call_operand.vmem [shape: f32[8,128], index: 1, kind: output, shape index: {}]  }
   0x1   :  { %v8_v0 = vld [vmem:[%s31_s0] sm:$0xff] }
   0x2   :  { %v9_v1 = vmul.f32 %v8_v0, %v8_v0 }
   0x4   :  { %10 = vst [vmem:[%s32_s1] sm:$0xff] %v9_v1 }

</bundles_post_ra>
